<compile_context>
chip_gen: v7x
topology: tpu7x:2x2x1
jax: 0.10.0
libtpu: 0.0.40
codegen_flags: <defaults>
</compile_context>

<pallas_src>
import jax
import jax.numpy as jnp
from jax.experimental import pallas as pl
from jax.experimental.pallas import tpu as pltpu


def global_gate_kernel(txt_ref, wtxt_ref, img_ref, bias_ref, out_ref):
    # txt_ref  : (1, TILE_L, Ht)  text-feature tile (input dtype), streamed
    # wtxt_ref : (1, Ht)          text projection weight (resident)
    # img_ref  : (1, 1, 1)        precomputed image score for this batch (f32)
    # bias_ref : (1, TILE_L)      per-position bias tile
    # out_ref  : (1, 1, TILE_L)   sigmoid gate tile (f32, lane-dense)
    txt = txt_ref[0]                     # (TILE_L, Ht), input dtype (no f32 copy)
    wtxt = wtxt_ref[...]                 # (1, Ht)

    prec = (jax.lax.Precision.HIGHEST
            if txt.dtype == jnp.float32 else jax.lax.Precision.DEFAULT)
    # (1, Ht) x (TILE_L, Ht), contracting Ht on the MXU -> lane-dense (1, TILE_L)
    # scores, accumulated in f32.
    scores = jax.lax.dot_general(
        wtxt, txt,
        dimension_numbers=(((1,), (1,)), ((), ())),
        preferred_element_type=jnp.float32,
        precision=prec,
    )                                    # (1, TILE_L) f32

    img_score = img_ref[0].astype(jnp.float32)        # (1, 1), broadcast over lanes
    bias = bias_ref[...].astype(jnp.float32)          # (1, TILE_L)

    out_ref[0] = jax.nn.sigmoid(scores + img_score + bias)


def _round_up(x, m):
    return ((x + m - 1) // m) * m


def _pick_tile_l(L, Ht, itemsize, per_buffer_budget_bytes=8 * 1024 * 1024):
    """Largest multiple of 128 such that one (TILE_L, Ht) text buffer stays under
    the per-buffer budget (sized for v7x's 64 MiB VMEM with double-buffering),
    capped at 1024 rows and at the 128-padded sequence length."""
    rows = per_buffer_budget_bytes // max(1, Ht * itemsize)
    rows = max(128, (rows // 128) * 128)
    return int(min(1024, rows, _round_up(L, 128)))


def global_gate(seq_txt_features, global_image_features, w_txt, w_img, bias,
                *, tile_l=None):
    B, L, Ht = seq_txt_features.shape
    Bi, Hi = global_image_features.shape
    assert B == Bi, "batch mismatch"
    in_dtype = seq_txt_features.dtype

    w_txt2 = jnp.asarray(w_txt).reshape(1, Ht).astype(in_dtype)
    bias2 = jnp.asarray(bias).reshape(1, L).astype(jnp.float32)

    # Image projection hoisted out of the tile loop (per review): a tiny, exact
    # f32 (B, Hi) reduction done once, passed to the kernel as one value/batch.
    img_scores = jnp.sum(
        global_image_features.astype(jnp.float32)
        * jnp.asarray(w_img).reshape(1, Hi).astype(jnp.float32),
        axis=-1,
    ).reshape(B, 1, 1)

    itemsize = jnp.dtype(in_dtype).itemsize
    if tile_l is None:
        tile_l = _pick_tile_l(L, Ht, itemsize)
    n_l = pl.cdiv(L, tile_l)

    txt_buf_bytes = tile_l * Ht * itemsize
    # Double-buffered text tiles + small resident blocks + slack; capped well
    # below v7x's 64 MiB physical VMEM.
    vmem_limit = int(min(48 * 1024 * 1024,
                         max(8 * 1024 * 1024, 3 * txt_buf_bytes + 2 * 1024 * 1024)))

    out = pl.pallas_call(
        global_gate_kernel,
        out_shape=jax.ShapeDtypeStruct((B, 1, L), jnp.float32),
        grid=(B, n_l),
        in_specs=[
            pl.BlockSpec((1, tile_l, Ht), lambda b, l: (b, l, 0)),  # streamed txt tiles
            pl.BlockSpec((1, Ht), lambda b, l: (0, 0)),             # resident txt weight
            pl.BlockSpec((1, 1, 1), lambda b, l: (b, 0, 0)),        # per-batch img score
            pl.BlockSpec((1, tile_l), lambda b, l: (0, l)),         # bias tile
        ],
        out_specs=pl.BlockSpec((1, 1, tile_l), lambda b, l: (b, 0, l)),
        compiler_params=pltpu.CompilerParams(
            dimension_semantics=("parallel", "parallel"),
            vmem_limit_bytes=vmem_limit,
        ),
    )(seq_txt_features, w_txt2, img_scores, bias2)

    # Matches torch for B > 1; torch's .squeeze() would also drop the batch dim
    # when B == 1 — we keep the explicit (B, L) shape.
    return out.reshape(B, L)


if __name__ == "__main__":
    # Small shapes consistent with the module; L > 128 exercises a full tile,
    # a partial (masked-boundary) tile and multiple batch grid steps.
    B = 2
    L = 200
    H_TXT = 32
    H_IMG = 64

    key = jax.random.PRNGKey(0)
    k1, k2, k3, k4, k5 = jax.random.split(key, 5)

    seq_txt_features = jax.random.normal(k1, (B, L, H_TXT), dtype=jnp.float32)
    global_image_features = jax.random.normal(k2, (B, H_IMG), dtype=jnp.float32)
    w_txt = jax.random.normal(k3, (1, H_TXT), dtype=jnp.float32) / (H_TXT ** 0.5)
    w_img = jax.random.normal(k4, (1, H_IMG), dtype=jnp.float32) / (H_IMG ** 0.5)
    # torch init zeros the bias; use a nonzero bias so the bias path is exercised.
    bias = 0.1 * jax.random.normal(k5, (L,), dtype=jnp.float32)

    out = jax.block_until_ready(
        global_gate(seq_txt_features, global_image_features, w_txt, w_img, bias))

    # Exact (elementwise f32) reference of the torch forward.
    ref_txt = jnp.sum(seq_txt_features * w_txt.reshape(1, 1, H_TXT), axis=-1)      # (B, L)
    ref_img = jnp.sum(global_image_features * w_img.reshape(1, H_IMG), axis=-1,
                      keepdims=True)                                               # (B, 1)
    ref = jax.nn.sigmoid(ref_txt + ref_img + bias.reshape(1, L))

    assert out.shape == (B, L), out.shape
    assert jnp.allclose(out, ref, atol=1e-5, rtol=1e-5), \
        float(jnp.max(jnp.abs(out - ref)))
    print("KERNEL_OK")
</pallas_src>

<mosaic_0001>
module attributes {stable_mosaic.version = 11 : i64} {
  func.func @global_gate_kernel(%arg0: i32, %arg1: i32, %arg2: memref<1x256x32xf32, #tpu.memory_space<vmem>>, %arg3: memref<1x32xf32, #tpu.memory_space<vmem>>, %arg4: memref<1x1x1xf32, #tpu.memory_space<vmem>>, %arg5: memref<1x256xf32, #tpu.memory_space<vmem>>, %arg6: memref<1x1x256xf32, #tpu.memory_space<vmem>>) attributes {dimension_semantics = [#tpu.dimension_semantics<parallel>, #tpu.dimension_semantics<parallel>], iteration_bounds = array<i64: 2, 1>, scalar_prefetch = 0 : i64, scratch_operands = 0 : i64, tpu.core_type = #tpu.core_type<tc>, window_params = [{transform_indices = @transform_0, window_bounds = array<i64: 1, 256, 32>}, {pipeline_mode = #tpu.pipeline_mode<synchronous>, transform_indices = @transform_1, window_bounds = array<i64: 1, 32>}, {transform_indices = @transform_2, window_bounds = array<i64: 1, 1, 1>}, {transform_indices = @transform_3, window_bounds = array<i64: 1, 256>}, {transform_indices = @transform_4, window_bounds = array<i64: 1, 1, 256>}]} {
    %c0 = arith.constant 0 : index
    %c0_0 = arith.constant 0 : index
    %c0_1 = arith.constant 0 : index
    %0 = vector.load %arg2[%c0, %c0_0, %c0_1] : memref<1x256x32xf32, #tpu.memory_space<vmem>>, vector<1x256x32xf32>
    %1 = vector.shape_cast %0 : vector<1x256x32xf32> to vector<256x32xf32>
    %c0_2 = arith.constant 0 : index
    %c0_3 = arith.constant 0 : index
    %2 = vector.load %arg3[%c0_2, %c0_3] : memref<1x32xf32, #tpu.memory_space<vmem>>, vector<1x32xf32>
    %cst = arith.constant dense<0.000000e+00> : vector<1x256xf32>
    %3 = tpu.matmul %2, %1, %cst {dimension_numbers = #tpu.dot_dimension_numbers<[1], [1], [0], [0], [0, 0, 1, 0], [], []>, precision = #tpu.contract_precision<fp32>} : vector<1x32xf32>, vector<256x32xf32>, vector<1x256xf32> -> vector<1x256xf32>
    %c0_4 = arith.constant 0 : index
    %c0_5 = arith.constant 0 : index
    %c0_6 = arith.constant 0 : index
    %4 = vector.load %arg4[%c0_4, %c0_5, %c0_6] : memref<1x1x1xf32, #tpu.memory_space<vmem>>, vector<1x1x1xf32>
    %5 = vector.shape_cast %4 : vector<1x1x1xf32> to vector<1x1xf32>
    %c0_7 = arith.constant 0 : index
    %c0_8 = arith.constant 0 : index
    %6 = vector.load %arg5[%c0_7, %c0_8] : memref<1x256xf32, #tpu.memory_space<vmem>>, vector<1x256xf32>
    %7 = vector.broadcast %5 : vector<1x1xf32> to vector<1x256xf32>
    %8 = arith.addf %3, %7 : vector<1x256xf32>
    %9 = arith.addf %8, %6 : vector<1x256xf32>
    %10 = arith.negf %9 : vector<1x256xf32>
    %11 = math.exp %10 : vector<1x256xf32>
    %cst_9 = arith.constant 1.000000e+00 : f32
    %12 = vector.broadcast %cst_9 : f32 to vector<1x256xf32>
    %13 = arith.addf %12, %11 : vector<1x256xf32>
    %14 = arith.divf %12, %13 : vector<1x256xf32>
    %c0_10 = arith.constant 0 : index
    %c0_11 = arith.constant 0 : index
    %c0_12 = arith.constant 0 : index
    %15 = vector.load %arg6[%c0_10, %c0_11, %c0_12] : memref<1x1x256xf32, #tpu.memory_space<vmem>>, vector<1x1x256xf32>
    %16 = vector.shape_cast %15 : vector<1x1x256xf32> to vector<1x256xf32>
    %17 = vector.shape_cast %14 : vector<1x256xf32> to vector<1x1x256xf32>
    tpu.vector_store %arg6[%c0_10, %c0_11, %c0_12], %17 {strides = array<i32>} : memref<1x1x256xf32, #tpu.memory_space<vmem>>, vector<1x1x256xf32>,
    return
  }
  func.func @transform_0(%arg0: i32, %arg1: i32) -> (i32, i32, i32) {
    %c0_i32 = arith.constant 0 : i32
    %c0_i32_0 = arith.constant 0 : i32
    return %arg0, %arg1, %c0_i32 : i32, i32, i32
  }
  func.func @transform_1(%arg0: i32, %arg1: i32) -> (i32, i32) {
    %c0_i32 = arith.constant 0 : i32
    %c0_i32_0 = arith.constant 0 : i32
    %c0_i32_1 = arith.constant 0 : i32
    return %c0_i32, %c0_i32_0 : i32, i32
  }
  func.func @transform_2(%arg0: i32, %arg1: i32) -> (i32, i32, i32) {
    %c0_i32 = arith.constant 0 : i32
    %c0_i32_0 = arith.constant 0 : i32
    %c0_i32_1 = arith.constant 0 : i32
    return %arg0, %c0_i32, %c0_i32_0 : i32, i32, i32
  }
  func.func @transform_3(%arg0: i32, %arg1: i32) -> (i32, i32) {
    %c0_i32 = arith.constant 0 : i32
    %c0_i32_0 = arith.constant 0 : i32
    return %c0_i32, %arg1 : i32, i32
  }
  func.func @transform_4(%arg0: i32, %arg1: i32) -> (i32, i32, i32) {
    %c0_i32 = arith.constant 0 : i32
    %c0_i32_0 = arith.constant 0 : i32
    return %arg0, %c0_i32, %arg1 : i32, i32, i32
  }
}

</mosaic_0001>

<bundles_post_ra>
// kernel: tpu_custom_call.1
= control target key start
LH: loop header
LB: loop body
LE: loop exit
PB: predicated region body
PF: predicated region fallthrough
CT: control target
= control target key end

     0   :  { %9 = vsyncpa [#allocation3], 0  ;;  %s2730_s0 = inlined_call_operand.vmem [shape: f32[2,200,32], index: 0, kind: input, shape index: {}]   ;;  %s2731_s1 = inlined_call_operand.vmem [shape: f32[1,32], index: 1, kind: input, shape index: {}]   ;;  %s2732_s2 = inlined_call_operand.vmem [shape: f32[2,1,1], index: 2, kind: input, shape index: {}]   ;;  %s2733_s3 = inlined_call_operand.vmem [shape: f32[1,200], index: 3, kind: input, shape index: {}]   ;;  %s2734_s4 = inlined_call_operand.hbm [shape: f32[2,1,200], index: 4, kind: output, shape index: {}]  }
   0x1   :  { %11 = vsyncpa [#allocation3 + $0x1], 0  ;;  %s2030_s15 = smov 0   ;;  %s2032_s16 = smov 0  }
   0x2   :  { %s2034_s17 = smov 0   ;;  %s2036_s18 = smov 0  }
   0x3   :  { %s2038_s19 = smov 0   ;;  %s2040_s20 = smov 0  }
   0x4 LB: > { %s1431_s21 = sadd.s32 4294967295, %s2000_s20   ;;  %s1432_s22 = sadd.s32 4294967294, %s2000_s20   ;;  %s2000_s20 = sphi %s2040_s20, %s17_s20   ;;  %s1996_s19 = sphi %s2038_s19, %s2822_s19   ;;  %s1992_s18 = sphi %s2036_s18, %s2821_s18   ;;  %s1988_s17 = sphi %s2034_s17, %s2820_s17   ;;  %s1984_s16 = sphi %s2032_s16, %s2819_s16   ;;  %s1980_s15 = sphi %s2030_s15, %s2818_s15  }
   0x5   : > { %s29_s23 = sadd.s32 1, %s1996_s19  ;;  %s139_s24 = sadd.s32 1, %s1988_s17 }
   0x6   : > { %p31_p0 = scmp.ge.s32.totalorder %s29_s23, 2  ;;  %p149_p1 = scmp.ne.s32.totalorder %s1988_s17, %s1984_s16 }
   0x7   : > { %p150_p2 = scmp.eq.s32.totalorder %s1431_s21, 1  ;;  %p155_p3 = scmp.ne.s32.totalorder %s1984_s16, %s1980_s15 }
   0x8   : > { %s2824_s23 = smov (%p31_p0, %s29_s23), 0  ;;  %p156_p5 = scmp.eq.s32.totalorder %s1432_s22, 1 }
   0x9   : > { %p2070_p4 = por %p150_p2, %p149_p1  ;;  %s134_s26 = ssub.s32 %s1996_s19, %s2824_s23 }
   0xa   : > { %p1436_p6 = scmp.ge.s32.totalorder %s2000_s20, 1  ;;  %p137_p7 = scmp.eq.s32.totalorder %s134_s26, 0 }
   0xb   : > { %p2077_p8 = por %p156_p5, %p155_p3  ;;  %p208_p9 = scmp.lt.s32.totalorder %s2000_s20, 3 }
   0xc   : > { %s2083_s28 = scalar_select %p137_p7, %s1988_s17, %s139_s24  }
   0xd   : > { %p209_p10 = pnand %p1436_p6, %p208_p9 }
   0xf   : > { %212 = sbr.rel (%p209_p10) target bundleno = 492 (0x1ec), region = 36 }
  0x16   : > { %p250_p11 = scmp.lt.s32.totalorder %s1992_s18, 1  ;;  %vm314_vm0 = vcmask 261120   ;;  %v302_v0 = vld [vmem:[%s2731_s1] sm:$0x1]  ;;  %s244_s21 = sand.u32 1, %s1984_s16  }
  0x17   : > { %v316_v1 = vsel %vm314_vm0, %v302_v0, 0  ;;  %s1437_s22 = sshll.u32 %s244_s21, 1  ;;  %s1446_s24 = sshll.u32 %s1992_s18, 5 }
  0x18   : > { %s2091_s5 = scalar_select %p250_p11, %s1992_s18, 1  ;;  %v2093_v2 = vand.u32 4294901760, %v316_v1 }
  0x19   : > { %s246_s26 = scalar_lea.vmem [#allocation2], %s1437_s22  ;;  %s1318_s7 = scalar_lea.sflag [#allocation3], %s244_s21 }
  0x1a   : > { %s1855_s6 = smul.u32 200, %s2091_s5  ;;  %v2097_v3 = vsub.f32 %v316_v1, %v2093_v2  ;;  %s263_s12 = scalar_lea.vmem %s2732_s2, %s2091_s5 }
  0x1b   : > { %s1334_s29 = sshll.u32 %s246_s26, 4  ;;  %s2004_s18 = smov [#allocation2]   ;;  %s2685_s29 = int_to_ptr.vmem [resolvable:$true] %s1334_s29 }
  0x1c   : > { %s2102_s9 = scalar_lea.vmem %s2730_s0, %s1855_s6  ;;  %v2105_v4 = vand.u32 4294901760, %v2097_v3  ;;  %s2683_s6 = scalar_lea.hbm %s2734_s4, %s1446_s24 }
  0x1d   : > { %v286_v5 = vld [vmem:[%s2102_s9 + $0x80] sm:$0xff]  ;;  %v287_v6 = vld [vmem:[%s2102_s9 + $0x88] sm:$0xff]  ;;  %v288_v12 = vld [vmem:[%s2102_s9 + $0x90] sm:$0xff]  ;;  %s1922_s8 = scalar_lea.vmem %s2685_s29, 32 }
  0x1e   : > { %v270_v7 = vld [vmem:[%s2102_s9] sm:$0xff]  ;;  %v2111_v8 = vsel %vm314_vm0, %v286_v5, 0  ;;  %v2114_v9 = vsel %vm314_vm0, %v287_v6, 0  ;;  %v271_v10 = vld [vmem:[%s2102_s9 + $0x8] sm:$0xff]  ;;  %v289_v13 = vld [vmem:[%s2102_s9 + $0x98] sm:$0xff]  ;;  %1581 = vmatprep.mubr.f32.mxu0 %v2105_v4  ;;  %v2132_v20 = vsel %vm314_vm0, %v288_v12, 0  ;;  %v514_v0 = vsub.f32 %v2097_v3, %v2105_v4  ;;  %p1923_p12 = scmp.ne.s32.totalorder %s2685_s29, %s1922_s8 }
  0x1f   : > { %v2118_v11 = vsel %vm314_vm0, %v270_v7, 0  ;;  %v463_v14 = vand.u32 4294901760, %v2111_v8  ;;  %v466_v15 = vand.u32 4294901760, %v2114_v9  ;;  %v2126_v16 = vsel %vm314_vm0, %v271_v10, 0  ;;  %v272_v18 = vld [vmem:[%s2102_s9 + $0x10] sm:$0xff]  ;;  %v273_v22 = vld [vmem:[%s2102_s9 + $0x18] sm:$0xff] }
  0x20   : > { %v415_v17 = vand.u32 4294901760, %v2118_v11  ;;  %v418_v19 = vand.u32 4294901760, %v2126_v16  ;;  %v2135_v21 = vsel %vm314_vm0, %v289_v13, 0  ;;  %v290_v23 = vld [vmem:[%s2102_s9 + $0xa0] sm:$0xff]  ;;  %v291_v24 = vld [vmem:[%s2102_s9 + $0xa8] sm:$0xff]  ;;  %v2147_v26 = vsel %vm314_vm0, %v272_v18, 0  ;;  %p1924_p13 = pnand %p1923_p12, %p2070_p4 }
  0x21   : > { %v2144_v25 = vpack.c.bf16 %v466_v15, %v463_v14  ;;  %v469_v28 = vand.u32 4294901760, %v2132_v20  ;;  %v472_v29 = vand.u32 4294901760, %v2135_v21  ;;  %v2160_v30 = vsel %vm314_vm0, %v273_v22, 0  ;;  %v274_v38 = vld [vmem:[%s2102_s9 + $0x20] sm:$0xff]  ;;  %v275_v39 = vld [vmem:[%s2102_s9 + $0x28] sm:$0xff]  ;;  %v292_v40 = vld [vmem:[%s2102_s9 + $0xb0] sm:$0xff] }
  0x22   : > { %v2153_v27 = vpack.c.bf16 %v418_v19, %v415_v17  ;;  %v2163_v31 = vsel %vm314_vm0, %v290_v23, 0  ;;  %v2166_v32 = vsel %vm314_vm0, %v291_v24, 0  ;;  %v421_v34 = vand.u32 4294901760, %v2147_v26  ;;  %v293_v41 = vld [vmem:[%s2102_s9 + $0xb8] sm:$0xff]  ;;  %v276_v52 = vld [vmem:[%s2102_s9 + $0x30] sm:$0xff]  ;;  %v294_v54 = vld [vmem:[%s2102_s9 + $0xc0] sm:$0xff]  ;;  %p1925_p0 = pneg %p1924_p13 }
  0x23   : > { %1652 = vmatprep.subr.bf16.mxu1 %v2144_v25  ;;  %1748 = vmatprep.subr.bf16.mxu0 %v2144_v25  ;;  %v2174_v33 = vpack.c.bf16 %v472_v29, %v469_v28  ;;  %v424_v35 = vand.u32 4294901760, %v2160_v30  ;;  %v2748_v36 = vand.u32 4294901760, %v2163_v31  ;;  %v2747_v37 = vand.u32 4294901760, %v2166_v32  ;;  %v277_v53 = vld [vmem:[%s2102_s9 + $0x38] sm:$0xff]  ;;  %v295_v55 = vld [vmem:[%s2102_s9 + $0xc8] sm:$0xff]  ;;  %v278_v6 = vld [vmem:[%s2102_s9 + $0x40] sm:$0xff] }
  0x24   : > { %1654 = vmatpush3.bf16.xpose.msra.mxu1 %v2153_v27  ;;  %1750 = vmatpush3.bf16.xpose.msra.mxu0 %v2153_v27  ;;  %v2199_v44 = vsel %vm314_vm0, %v274_v38, 0  ;;  %v2202_v45 = vsel %vm314_vm0, %v275_v39, 0  ;;  %v2205_v46 = vsel %vm314_vm0, %v292_v40, 0  ;;  %v2208_v47 = vsel %vm314_vm0, %v293_v41, 0  ;;  %v279_v7 = vld [vmem:[%s2102_s9 + $0x48] sm:$0xff]  ;;  %v296_v10 = vld [vmem:[%s2102_s9 + $0xd0] sm:$0xff] }
  0x25   : > { %1656 = vmatprep.subr.bf16.mxu1 %v2174_v33  ;;  %1752 = vmatprep.subr.bf16.mxu0 %v2174_v33  ;;  %v2190_v42 = vpack.c.bf16 %v424_v35, %v421_v34  ;;  %v2196_v43 = vpack.c.bf16 %v2747_v37, %v2748_v36  ;;  %v2746_v48 = vand.u32 4294901760, %v2199_v44  ;;  %v2745_v49 = vand.u32 4294901760, %v2202_v45  ;;  %v297_v12 = vld [vmem:[%s2102_s9 + $0xd8] sm:$0xff] }
  0x26   : > { %v2744_v50 = vand.u32 4294901760, %v2205_v46  ;;  %v2743_v51 = vand.u32 4294901760, %v2208_v47  ;;  %v2235_v58 = vsel %vm314_vm0, %v276_v52, 0  ;;  %v2238_v59 = vsel %vm314_vm0, %v277_v53, 0 }
  0x27   : > { %2763 = vst [vmem:[#allocation5_spill] sm:$0xff] %v2190_v42  ;;  %2764 = vst [vmem:[#allocation6_spill] sm:$0xff] %v2196_v43  ;;  %v2226_v56 = vpack.c.bf16 %v2745_v49, %v2746_v48  ;;  %v2241_v60 = vsel %vm314_vm0, %v294_v54, 0  ;;  %v2244_v61 = vsel %vm314_vm0, %v295_v55, 0  ;;  %v2742_v62 = vand.u32 4294901760, %v2235_v58  ;;  %v280_v54 = vld [vmem:[%s2102_s9 + $0x50] sm:$0xff] }
  0x28   : > { %v2232_v57 = vpack.c.bf16 %v2743_v51, %v2744_v50  ;;  %v2741_v63 = vand.u32 4294901760, %v2238_v59  ;;  %v2736_v1 = vand.u32 4294901760, %v2241_v60  ;;  %v2735_v5 = vand.u32 4294901760, %v2244_v61  ;;  %v281_v55 = vld [vmem:[%s2102_s9 + $0x58] sm:$0xff] }
  0x29   : > { %2765 = vst [vmem:[#allocation7_spill] sm:$0xff] %v2226_v56  ;;  %v2266_v18 = vand.u32 4294901760, %v514_v0  ;;  %v2275_v23 = vsel %vm314_vm0, %v278_v6, 0  ;;  %v2278_v24 = vsel %vm314_vm0, %v279_v7, 0  ;;  %v2281_v38 = vsel %vm314_vm0, %v296_v10, 0  ;;  %v298_v0 = vld [vmem:[%s2102_s9 + $0xe0] sm:$0xff] }
  0x2a   : > { %2766 = vst [vmem:[#allocation8_spill] sm:$0xff] %v2232_v57  ;;  %v2264_v13 = vpack.c.bf16 %v2741_v63, %v2742_v62  ;;  %v2272_v22 = vpack.c.bf16 %v2735_v5, %v2736_v1  ;;  %v2284_v39 = vsel %vm314_vm0, %v297_v12, 0  ;;  %v2740_v40 = vand.u32 4294901760, %v2275_v23  ;;  %v299_v6 = vld [vmem:[%s2102_s9 + $0xe8] sm:$0xff]  ;;  %v301_v63 = vld [vmem:[%s2102_s9 + $0xf8] sm:$0xff] }
  0x2b   : > { %1479 = vmatprep.mubr.f32.mxu1 %v2266_v18  ;;  %v2737_v41 = vand.u32 4294901760, %v2278_v24  ;;  %v2739_v52 = vand.u32 4294901760, %v2281_v38  ;;  %v2738_v53 = vand.u32 4294901760, %v2284_v39  ;;  %v2312_v12 = vsel %vm314_vm0, %v280_v54, 0 }
  0x2c   : > { %1658 = vmatpush3.bf16.xpose.msra.mxu1 %v2190_v42  ;;  %1754 = vmatpush3.bf16.xpose.msra.mxu0 %v2190_v42  ;;  %2767 = vst [vmem:[#allocation9_spill] sm:$0xff] %v2264_v13  ;;  %2768 = vst [vmem:[#allocation10_spill] sm:$0xff] %v2272_v22  ;;  %v2315_v5 = vsel %vm314_vm0, %v281_v55, 0  ;;  %v2318_v1 = vsel %vm314_vm0, %v298_v0, 0  ;;  %v282_v0 = vld [vmem:[%s2102_s9 + $0x60] sm:$0xff]  ;;  %v2338_v62 = vsub.f32 %v2111_v8, %v463_v14  ;;  %v412_v14 = vsel %vm314_vm0, %v301_v63, 0 }
  0x2d   : > { %1660 = vmatprep.subr.bf16.mxu1 %v2196_v43  ;;  %1756 = vmatprep.subr.bf16.mxu0 %v2196_v43  ;;  %v2303_v7 = vpack.c.bf16 %v2737_v41, %v2740_v40  ;;  %v2309_v10 = vpack.c.bf16 %v2738_v53, %v2739_v52  ;;  %v2321_v41 = vsel %vm314_vm0, %v299_v6, 0  ;;  %v445_v53 = vand.u32 4294901760, %v2312_v12  ;;  %v283_v40 = vld [vmem:[%s2102_s9 + $0x68] sm:$0xff]  ;;  %v300_v6 = vld [vmem:[%s2102_s9 + $0xf0] sm:$0xff] }
  0x2e   : > { %v448_v52 = vand.u32 4294901760, %v2315_v5  ;;  %v499_v54 = vand.u32 4294901760, %v2318_v1  ;;  %v502_v55 = vand.u32 4294901760, %v2321_v41  ;;  %v2345_v50 = vsub.f32 %v2114_v9, %v466_v15 }
  0x2f   : > { %2769 = vst [vmem:[#allocation11_spill] sm:$0xff] %v2303_v7  ;;  %2770 = vst [vmem:[#allocation12_spill] sm:$0xff] %v2309_v10  ;;  %v355_v48 = vsel %vm314_vm0, %v282_v0, 0  ;;  %v358_v37 = vsel %vm314_vm0, %v283_v40, 0  ;;  %v2354_v36 = vsub.f32 %v2118_v11, %v415_v17  ;;  %v409_v8 = vsel %vm314_vm0, %v300_v6, 0 }
  0x30   : > { %v2340_v51 = vpack.c.bf16 %v448_v52, %v445_v53  ;;  %v2347_v49 = vpack.c.bf16 %v502_v55, %v499_v54  ;;  %v2361_v9 = vsub.f32 %v2126_v16, %v418_v19  ;;  %v2366_v15 = vsub.f32 %v2132_v20, %v469_v28 }
  0x31   : > { %v2371_v11 = vsub.f32 %v2135_v21, %v472_v29  ;;  %v2376_v17 = vsub.f32 %v2147_v26, %v421_v34  ;;  %v2381_v16 = vsub.f32 %v2160_v30, %v424_v35  ;;  %v2773_v19 = vand.u32 4294901760, %v2163_v31  ;;  %v284_v34 = vld [vmem:[%s2102_s9 + $0x70] sm:$0xff]  ;;  %v285_v30 = vld [vmem:[%s2102_s9 + $0x78] sm:$0xff]  ;;  %s1926_s9 = sshll.u32 %s2004_s18, 4  ;;  %s1927_s9 = int_to_ptr.vmem [resolvable:$false] %s1926_s9 }
  0x32   : > { %2771 = vst [vmem:[#allocation13_spill] sm:$0xff] %v2340_v51  ;;  %2772 = vst [vmem:[#allocation14_spill] sm:$0xff] %v2347_v49  ;;  %v451_v21 = vand.u32 4294901760, %v355_v48  ;;  %v454_v28 = vand.u32 4294901760, %v358_v37  ;;  %v505_v26 = vand.u32 4294901760, %v409_v8  ;;  %v508_v29 = vand.u32 4294901760, %v412_v14  ;;  %p1929_p1 = scmp.lt.s32.totalorder %s2685_s29, %s1927_s9 }
  0x33   : > { %v2386_v20 = vsub.f32 %v2163_v31, %v2773_v19  ;;  %v637_v35 = vand.u32 4294901760, %v2338_v62  ;;  %v644_v63 = vand.u32 4294901760, %v2345_v50  ;;  %v2774_v31 = vand.u32 4294901760, %v2166_v32  ;;  %s1928_s10 = scalar_lea.vmem %s1927_s9, 64 }
  0x34   : > { %1662 = vmatpush3.bf16.xpose.msra.mxu1 %v2226_v56  ;;  %1758 = vmatpush3.bf16.xpose.msra.mxu0 %v2226_v56  ;;  %v2775_v0 = vand.u32 4294901760, %v2199_v44  ;;  %v2776_v19 = vand.u32 4294901760, %v2202_v45  ;;  %v2473_v42 = vsub.f32 %v2312_v12, %v445_v53  ;;  %p1930_p2 = scmp.lt.s32.totalorder %s1928_s10, %s1922_s8 }
  0x35   : > { %1664 = vmatprep.subr.bf16.mxu1 %v2232_v57  ;;  %1760 = vmatprep.subr.bf16.mxu0 %v2232_v57  ;;  %v2399_v40 = vsub.f32 %v2166_v32, %v2774_v31  ;;  %v2779_v31 = vand.u32 4294901760, %v2235_v58  ;;  %v2788_v57 = vand.u32 4294901760, %v2284_v39 }
  0x36   : > { %v2404_v6 = vsub.f32 %v2199_v44, %v2775_v0  ;;  %v2780_v0 = vand.u32 4294901760, %v2238_v59  ;;  %p1931_p3 = por %p1930_p2, %p1929_p1 }
  0x37   : > { %v2424_v44 = vsub.f32 %v2235_v58, %v2779_v31  ;;  %v361_v58 = vsel %vm314_vm0, %v284_v34, 0  ;;  %v364_v31 = vsel %vm314_vm0, %v285_v30, 0  ;;  %v2787_v34 = vand.u32 4294901760, %v2281_v38 }
  0x38   : > { %v2468_v56 = vsub.f32 %v2284_v39, %v2788_v57  ;;  %v460_v43 = vand.u32 4294901760, %v364_v31  ;;  %v658_v57 = vand.u32 4294901760, %v2371_v11  ;;  %v2485_v39 = vsub.f32 %v2321_v41, %v502_v55  ;;  %p1932_p5 = pnand %p1931_p3, %p1925_p0 }
  0x39   : > { %v2463_v30 = vsub.f32 %v2281_v38, %v2787_v34  ;;  %v2479_v38 = vsub.f32 %v2318_v1, %v499_v54  ;;  %v2494_v54 = vsub.f32 %v358_v37, %v454_v28  ;;  %v2498_v34 = vsub.f32 %v412_v14, %v508_v29 }
  0x3a   : > { %v1715_v37 = vpack.c.bf16 %v2345_v50, %v2338_v62  ;;  %v539_v14 = vand.u32 4294901760, %v2376_v17 }
  0x3c   : > { %1666 = vmatpush3.bf16.xpose.msra.mxu1 %v2264_v13  ;;  %1762 = vmatpush3.bf16.xpose.msra.mxu0 %v2264_v13 }
  0x3d   : > { %1668 = vmatprep.subr.bf16.mxu1 %v2272_v22  ;;  %1764 = vmatprep.subr.bf16.mxu0 %v2272_v22  ;;  %v2445_v22 = vpack.c.bf16 %v508_v29, %v505_v26 }
  0x3f   : > { %2784 = vst [vmem:[#allocation16_spill] sm:$0xff] %v2445_v22 }
  0x44   : > { %1670 = vmatpush3.bf16.xpose.msra.mxu1 %v2303_v7  ;;  %1766 = vmatpush3.bf16.xpose.msra.mxu0 %v2303_v7  ;;  %v2778_v7 = vand.u32 4294901760, %v2208_v47 }
  0x45   : > { %1672 = vmatprep.subr.bf16.mxu1 %v2309_v10  ;;  %1768 = vmatprep.subr.bf16.mxu0 %v2309_v10 }
  0x46   : > { %v2419_v32 = vsub.f32 %v2208_v47, %v2778_v7  ;;  %v2441_v7 = vpack.c.bf16 %v454_v28, %v451_v21  ;;  %v567_v28 = vand.u32 4294901760, %v2424_v44 }
  0x48   : > { %2783 = vst [vmem:[#allocation15_spill] sm:$0xff] %v2441_v7 }
  0x4c   : > { %1674 = vmatpush3.bf16.xpose.msra.mxu1 %v2340_v51  ;;  %1770 = vmatpush3.bf16.xpose.msra.mxu0 %v2340_v51  ;;  %v2777_v51 = vand.u32 4294901760, %v2205_v46 }
  0x4d   : > { %1676 = vmatprep.subr.bf16.mxu1 %v2347_v49  ;;  %1772 = vmatprep.subr.bf16.mxu0 %v2347_v49  ;;  %v2409_v49 = vsub.f32 %v2202_v45, %v2776_v19  ;;  %v2429_v45 = vsub.f32 %v2238_v59, %v2780_v0  ;;  %v2781_v19 = vand.u32 4294901760, %v2241_v60  ;;  %v638_v59 = vsub.f32 %v2338_v62, %v637_v35 }
  0x4e   : > { %v2414_v10 = vsub.f32 %v2205_v46, %v2777_v51  ;;  %v2782_v51 = vand.u32 4294901760, %v2244_v61  ;;  %v645_v0 = vsub.f32 %v2345_v50, %v644_v63  ;;  %v2794_v50 = vld [vmem:[#allocation5_spill] sm:$0xff] }
  0x4f   : > { %v2434_v46 = vsub.f32 %v2241_v60, %v2781_v19  ;;  %v2785_v19 = vand.u32 4294901760, %v2275_v23  ;;  %v457_v60 = vand.u32 4294901760, %v361_v58  ;;  %v639_v53 = vand.u32 4294901760, %v638_v59 }
  0x50   : > { %v2439_v47 = vsub.f32 %v2244_v61, %v2782_v51  ;;  %v2786_v61 = vand.u32 4294901760, %v2278_v24  ;;  %v646_v12 = vand.u32 4294901760, %v645_v0  ;;  %v2506_v0 = vsub.f32 %v364_v31, %v460_v43 }
  0x51   : > { %v2453_v13 = vsub.f32 %v2275_v23, %v2785_v19  ;;  %v532_v23 = vand.u32 4294901760, %v2361_v9  ;;  %v651_v19 = vand.u32 4294901760, %v2366_v15  ;;  %v2500_v41 = vpack.c.bf16 %v460_v43, %v457_v60 }
  0x52   : > { %v2458_v51 = vsub.f32 %v2278_v24, %v2786_v61  ;;  %v2476_v24 = vsub.f32 %v2315_v5, %v448_v52  ;;  %v2789_v5 = vand.u32 4294901760, %v2354_v36  ;;  %v2492_v52 = vsub.f32 %v355_v48, %v451_v21 }
  0x53   : > { %v2496_v61 = vsub.f32 %v409_v8, %v505_v26  ;;  %v2502_v55 = vsub.f32 %v361_v58, %v457_v60  ;;  %v652_v59 = vsub.f32 %v2366_v15, %v651_v19  ;;  %v659_v48 = vsub.f32 %v2371_v11, %v658_v57 }
  0x54   : > { %1678 = vmatpush3.bf16.xpose.msra.mxu1 %v2441_v7  ;;  %1774 = vmatpush3.bf16.xpose.msra.mxu0 %v2441_v7  ;;  %v526_v1 = vsub.f32 %v2354_v36, %v2789_v5  ;;  %v1779_v7 = vpack.c.bf16 %v644_v63, %v637_v35  ;;  %v1683_v8 = vpack.c.bf16 %v646_v12, %v639_v53  ;;  %v546_v26 = vand.u32 4294901760, %v2381_v16 }
  0x55   : > { %1680 = vmatprep.subr.bf16.mxu1 %v2445_v22  ;;  %1776 = vmatprep.subr.bf16.mxu0 %v2445_v22  ;;  %v533_v22 = vsub.f32 %v2361_v9, %v532_v23  ;;  %v653_v58 = vand.u32 4294901760, %v652_v59  ;;  %v660_v53 = vand.u32 4294901760, %v659_v48  ;;  %v672_v59 = vand.u32 4294901760, %v2399_v40 }
  0x56   : > { %v527_v21 = vand.u32 4294901760, %v526_v1  ;;  %v665_v1 = vand.u32 4294901760, %v2386_v20  ;;  %v2790_v60 = vmov %v2789_v5  ;;  %v547_v48 = vsub.f32 %v2381_v16, %v546_v26 }
  0x57   : > { %v534_v63 = vand.u32 4294901760, %v533_v22  ;;  %v540_v22 = vsub.f32 %v2376_v17, %v539_v14  ;;  %v1781_v35 = vpack.c.bf16 %v532_v23, %v2790_v60  ;;  %v1687_v43 = vpack.c.bf16 %v660_v53, %v653_v58  ;;  %v303_v58 = vld [vmem:[%s263_s12] sm:$0x1] }
  0x58   : > { %v1783_v29 = vpack.c.bf16 %v658_v57, %v651_v19  ;;  %v666_v12 = vsub.f32 %v2386_v20, %v665_v1  ;;  %v673_v5 = vsub.f32 %v2399_v40, %v672_v59  ;;  %v548_v23 = vand.u32 4294901760, %v547_v48 }
  0x59   : > { %v1685_v31 = vpack.c.bf16 %v534_v63, %v527_v21  ;;  %v553_v21 = vand.u32 4294901760, %v2404_v6  ;;  %v560_v19 = vand.u32 4294901760, %v2409_v49  ;;  %v1785_v60 = vpack.c.bf16 %v546_v26, %v539_v14 }
  0x5a   : > { %v667_v57 = vand.u32 4294901760, %v666_v12  ;;  %v674_v63 = vand.u32 4294901760, %v673_v5  ;;  %v1787_v12 = vpack.c.bf16 %v672_v59, %v665_v1  ;;  %v700_v1 = vand.u32 4294901760, %v2439_v47 }
  0x5b   : > { %v554_v53 = vsub.f32 %v2404_v6, %v553_v21  ;;  %v2797_v62 = vpack.c.bf16 %v2409_v49, %v2404_v6  ;;  %v2808_v6 = vld [vmem:[#allocation12_spill] sm:$0xff] }
  0x5c   : > { %1682 = vmatpush3.bf16.xpose.msra.mxu1 %v2500_v41  ;;  %1778 = vmatpush3.bf16.xpose.msra.mxu0 %v2500_v41 }
  0x5d   : > { %1684 = vmatprep.subr.bf16.mxu1 %v1683_v8  ;;  %1780 = vmatprep.subr.bf16.mxu0 %v1779_v7  ;;  %v541_v7 = vand.u32 4294901760, %v540_v22  ;;  %v555_v48 = vand.u32 4294901760, %v554_v53  ;;  %v701_v53 = vsub.f32 %v2439_v47, %v700_v1 }
  0x63   : > { %1480 = vmatmul.mubr.f32.vlgmr.msra.gmra.mrb[0].mxu1 %v2266_v18  ;;  %1582 = vmatmul.mubr.f32.vlgmr.msra.gmra.mrb[0].mxu0 %v2105_v4  ;;  %v679_v18 = vand.u32 4294901760, %v2414_v10  ;;  %v686_v4 = vand.u32 4294901760, %v2419_v32 }
  0x64   : > { %1686 = vmatpush3.bf16.xpose.msra.mxu1 %v1685_v31  ;;  %1782 = vmatpush3.bf16.xpose.msra.mxu0 %v1781_v35  ;;  %v2002_v31 = vmov 0   ;;  %v1689_v35 = vpack.c.bf16 %v548_v23, %v541_v7  ;;  %v574_v7 = vand.u32 4294901760, %v2429_v45  ;;  %v693_v23 = vand.u32 4294901760, %v2434_v46 }
  0x65   : > { %1688 = vmatprep.subr.bf16.mxu1 %v1687_v43  ;;  %1784 = vmatprep.subr.bf16.mxu0 %v1783_v29  ;;  %v561_v43 = vsub.f32 %v2409_v49, %v560_v19  ;;  %v1691_v29 = vpack.c.bf16 %v674_v63, %v667_v57  ;;  %v680_v5 = vsub.f32 %v2414_v10, %v679_v18  ;;  %v2804_v49 = vld [vmem:[#allocation10_spill] sm:$0xff] }
  0x66   : > { %1513 = vmatprep.mubr.f32.mxu1 %v2093_v2  ;;  %1615 = vmatprep.mubr.f32.mxu0 %v2093_v2  ;;  %v687_v22 = vsub.f32 %v2419_v32, %v686_v4  ;;  %v1789_v57 = vpack.c.bf16 %v560_v19, %v553_v21  ;;  %v568_v63 = vsub.f32 %v2424_v44, %v567_v28  ;;  %v702_v21 = vand.u32 4294901760, %v701_v53 }
  0x67   : > { %1913 = vset.pattern.permute.xlu0 %v2002_v31  ;;  %v562_v8 = vand.u32 4294901760, %v561_v43  ;;  %v681_v14 = vand.u32 4294901760, %v680_v5  ;;  %v588_v5 = vand.u32 4294901760, %v2458_v51  ;;  %v707_v19 = vand.u32 4294901760, %v2463_v30 }
  0x68   : > { %307 = vperm.xlu0 %1913, %v303_v58   ;;  %v688_v26 = vand.u32 4294901760, %v687_v22  ;;  %v575_v58 = vsub.f32 %v2429_v45, %v574_v7  ;;  %v569_v43 = vand.u32 4294901760, %v568_v63  ;;  %v1793_v22 = vpack.c.bf16 %v574_v7, %v567_v28 }
  0x69   : > { %v1693_v59 = vpack.c.bf16 %v562_v8, %v555_v48  ;;  %v721_v53 = vand.u32 4294901760, %v2479_v38 }
  0x6a   : > { %v1695_v31 = vpack.c.bf16 %v688_v26, %v681_v14  ;;  %v589_v14 = vsub.f32 %v2458_v51, %v588_v5 }
  0x6c   : > { %1690 = vmatpush3.bf16.xpose.msra.mxu1 %v1689_v35  ;;  %1786 = vmatpush3.bf16.xpose.msra.mxu0 %v1785_v60  ;;  %v1791_v35 = vpack.c.bf16 %v686_v4, %v679_v18  ;;  %v694_v60 = vsub.f32 %v2434_v46, %v693_v23  ;;  %v714_v18 = vand.u32 4294901760, %v2468_v56 }
  0x6d   : > { %1692 = vmatprep.subr.bf16.mxu1 %v1691_v29  ;;  %1788 = vmatprep.subr.bf16.mxu0 %v1787_v12  ;;  %v576_v29 = vand.u32 4294901760, %v575_v58  ;;  %v581_v12 = vand.u32 4294901760, %v2453_v13 }
  0x6e   : > { %v695_v8 = vand.u32 4294901760, %v694_v60  ;;  %v715_v63 = vsub.f32 %v2468_v56, %v714_v18  ;;  %v602_v60 = vand.u32 4294901760, %v2476_v24 }
  0x6f   : > { %v1697_v4 = vpack.c.bf16 %v576_v29, %v569_v43  ;;  %v582_v48 = vsub.f32 %v2453_v13, %v581_v12  ;;  %v1797_v43 = vpack.c.bf16 %v588_v5, %v581_v12 }
  0x70   : > { %v1699_v26 = vpack.c.bf16 %v702_v21, %v695_v8  ;;  %v716_v7 = vand.u32 4294901760, %v715_v63  ;;  %v603_v8 = vsub.f32 %v2476_v24, %v602_v60  ;;  %v735_v63 = vand.u32 4294901760, %v2496_v61 }
  0x71   : > { %v583_v58 = vand.u32 4294901760, %v582_v48 }
  0x74   : > { %1694 = vmatpush3.bf16.xpose.msra.mxu1 %v1693_v59  ;;  %1790 = vmatpush3.bf16.xpose.msra.mxu0 %v1789_v57  ;;  %v1795_v59 = vpack.c.bf16 %v700_v1, %v693_v23  ;;  %v708_v57 = vsub.f32 %v2463_v30, %v707_v19  ;;  %v728_v23 = vand.u32 4294901760, %v2485_v39 }
  0x75   : > { %1696 = vmatprep.subr.bf16.mxu1 %v1695_v31  ;;  %1792 = vmatprep.subr.bf16.mxu0 %v1791_v35  ;;  %v590_v31 = vand.u32 4294901760, %v589_v14  ;;  %v595_v35 = vand.u32 4294901760, %v2473_v42 }
  0x76   : > { %v709_v28 = vand.u32 4294901760, %v708_v57  ;;  %v729_v48 = vsub.f32 %v2485_v39, %v728_v23  ;;  %v616_v57 = vand.u32 4294901760, %v2494_v54 }
  0x77   : > { %v1701_v1 = vpack.c.bf16 %v590_v31, %v583_v58  ;;  %v596_v29 = vsub.f32 %v2473_v42, %v595_v35  ;;  %v1801_v58 = vpack.c.bf16 %v602_v60, %v595_v35 }
  0x78   : > { %v1703_v21 = vpack.c.bf16 %v716_v7, %v709_v28  ;;  %v730_v5 = vand.u32 4294901760, %v729_v48  ;;  %v617_v28 = vsub.f32 %v2494_v54, %v616_v57 }
  0x79   : > { %v597_v14 = vand.u32 4294901760, %v596_v29 }
  0x7c   : > { %1698 = vmatpush3.bf16.xpose.msra.mxu1 %v1697_v4  ;;  %1794 = vmatpush3.bf16.xpose.msra.mxu0 %v1793_v22  ;;  %v1799_v4 = vpack.c.bf16 %v714_v18, %v707_v19  ;;  %v722_v22 = vsub.f32 %v2479_v38, %v721_v53  ;;  %v742_v19 = vand.u32 4294901760, %v2498_v34 }
  0x7d   : > { %1700 = vmatprep.subr.bf16.mxu1 %v1699_v26  ;;  %1796 = vmatprep.subr.bf16.mxu0 %v1795_v59  ;;  %v604_v26 = vand.u32 4294901760, %v603_v8  ;;  %v609_v59 = vand.u32 4294901760, %v2492_v52 }
  0x7e   : > { %v723_v12 = vand.u32 4294901760, %v722_v22  ;;  %v743_v29 = vsub.f32 %v2498_v34, %v742_v19  ;;  %v630_v22 = vand.u32 4294901760, %v2506_v0 }
  0x7f   : > { %v1705_v18 = vpack.c.bf16 %v604_v26, %v597_v14  ;;  %v610_v31 = vsub.f32 %v2492_v52, %v609_v59  ;;  %v1805_v14 = vpack.c.bf16 %v616_v57, %v609_v59  ;;  %v2791_v59 = vpack.c.bf16 %v2361_v9, %v2354_v36 }
  0x80   : > { %v1707_v7 = vpack.c.bf16 %v730_v5, %v723_v12  ;;  %v744_v60 = vand.u32 4294901760, %v743_v29  ;;  %v1807_v12 = vpack.c.bf16 %v742_v19, %v735_v63  ;;  %v2792_v57 = vpack.c.bf16 %v2371_v11, %v2366_v15  ;;  %v2800_v15 = vld [vmem:[#allocation8_spill] sm:$0xff] }
  0x81   : > { %v611_v8 = vand.u32 4294901760, %v610_v31  ;;  %v2795_v36 = vpack.c.bf16 %v2399_v40, %v2386_v20  ;;  %v2799_v9 = vpack.c.bf16 %v2419_v32, %v2414_v10  ;;  %v2801_v11 = vpack.c.bf16 %v2429_v45, %v2424_v44  ;;  %v2806_v10 = vld [vmem:[#allocation11_spill] sm:$0xff]  ;;  %v2810_v44 = vld [vmem:[#allocation13_spill] sm:$0xff] }
  0x82   : > { %v2805_v20 = vpack.c.bf16 %v2458_v51, %v2453_v13  ;;  %v2807_v40 = vpack.c.bf16 %v2468_v56, %v2463_v30  ;;  %v2809_v32 = vpack.c.bf16 %v2476_v24, %v2473_v42  ;;  %v2811_v45 = vpack.c.bf16 %v2485_v39, %v2479_v38  ;;  %v2812_v13 = vld [vmem:[#allocation14_spill] sm:$0xff]  ;;  %v2814_v56 = vld [vmem:[#allocation15_spill] sm:$0xff]  ;;  %v2816_v42 = vld [vmem:[#allocation16_spill] sm:$0xff] }
  0x83   : > { %v2817_v51 = vpack.c.bf16 %v2506_v0, %v2502_v55  ;;  %v310_v30 = vlaneseq }
  0x84   : > { %1702 = vmatpush3.bf16.xpose.msra.mxu1 %v1701_v1  ;;  %1798 = vmatpush3.bf16.xpose.msra.mxu0 %v1797_v43  ;;  %v1803_v1 = vpack.c.bf16 %v728_v23, %v721_v53  ;;  %v736_v43 = vsub.f32 %v2496_v61, %v735_v63  ;;  %v631_v23 = vsub.f32 %v2506_v0, %v630_v22 }
  0x85   : > { %1704 = vmatprep.subr.bf16.mxu1 %v1703_v21  ;;  %1800 = vmatprep.subr.bf16.mxu0 %v1799_v4  ;;  %v618_v21 = vand.u32 4294901760, %v617_v28  ;;  %v623_v4 = vand.u32 4294901760, %v2502_v55  ;;  %v311_v24 = vshrl.u32 %v310_v30, 7  ;;  %vm1314_vm1 = vcmp.lt.s32.totalorder %v310_v30, 256 }
  0x86   : > { %v737_v35 = vand.u32 4294901760, %v736_v43 }
  0x87   : > { %v1709_v48 = vpack.c.bf16 %v618_v21, %v611_v8  ;;  %v624_v53 = vsub.f32 %v2502_v55, %v623_v4  ;;  %v1809_v31 = vpack.c.bf16 %v630_v22, %v623_v4  ;;  %v312_v38 = vsub.s32 0, %v311_v24 }
  0x88   : > { %v1711_v26 = vpack.c.bf16 %v744_v60, %v737_v35  ;;  %v2003_v35 = vmov 1966171168  }
  0x89   : > { %v625_v5 = vand.u32 4294901760, %v624_v53  ;;  %v1298_v60 = vunpack.c.l.s4 %v2003_v35 }
  0x8c   : > { %1706 = vmatpush3.bf16.xpose.msra.mxu1 %v1705_v18  ;;  %1802 = vmatpush3.bf16.xpose.msra.mxu0 %v1801_v58  ;;  %v632_v18 = vand.u32 4294901760, %v631_v23 }
  0x8d   : > { %1708 = vmatprep.subr.bf16.mxu1 %v1707_v7  ;;  %1804 = vmatprep.subr.bf16.mxu0 %v1803_v1 }
  0x8e   : > { %v1713_v58 = vpack.c.bf16 %v632_v18, %v625_v5 }
  0x94   : > { %1710 = vmatpush3.bf16.xpose.msra.mxu1 %v1709_v48  ;;  %1806 = vmatpush3.bf16.xpose.msra.mxu0 %v1805_v14  ;;  %v1299_v48 = vunpack.c.0.s8 %v1298_v60 }
  0x95   : > { %1712 = vmatprep.subr.bf16.mxu1 %v1711_v26  ;;  %1808 = vmatprep.subr.bf16.mxu0 %v1807_v12 }
  0x96   : > { %v1302_v53 = vsub.s32 %v1299_v48, %v311_v24 }
  0x9c   : > { %1714 = vmatpush3.bf16.xpose.msra.mxu1 %v1713_v58  ;;  %1810 = vmatpush3.bf16.xpose.msra.mxu0 %v1809_v31 }
  0x9d   : > { %1716 = vmatprep.subr.bf16.mxu1 %v1715_v37  ;;  %1812 = vmatprep.subr.bf16.mxu0 %v2144_v25  ;;  %v2793_v25 = vpack.c.bf16 %v2381_v16, %v2376_v17  ;;  %v2802_v17 = vld [vmem:[#allocation9_spill] sm:$0xff]  ;;  %v2803_v16 = vpack.c.bf16 %v2439_v47, %v2434_v46  ;;  %v2813_v46 = vpack.c.bf16 %v2494_v54, %v2492_v52  ;;  %v304_v54 = vld [vmem:[%s2733_s3] sm:$0x3] }
  0x9e   : > { %v2815_v47 = vpack.c.bf16 %v2498_v34, %v2496_v61  ;;  %v1276_v61 = vsub.s32 1, %v311_v24  ;;  %v1273_v0 = vrot.slane %v304_v54, %v312_v38 }
  0xa3   : > { %1514 = vmatmul.mubr.f32.vlgmr.msra.gmra.mrb[0].mxu1 %v2093_v2  ;;  %1616 = vmatmul.mubr.f32.vlgmr.msra.gmra.mrb[0].mxu0 %v2093_v2 }
  0xa4   : > { %1718 = vmatpush3.bf16.xpose.msra.mxu1 %v2791_v59  ;;  %1814 = vmatpush3.bf16.xpose.msra.mxu0 %v2153_v27  ;;  %v2796_v27 = vld [vmem:[#allocation6_spill] sm:$0xff] }
  0xa5   : > { %1720 = vmatprep.subr.bf16.mxu1 %v2792_v57  ;;  %1816 = vmatprep.subr.bf16.mxu0 %v2174_v33  ;;  %v2798_v33 = vld [vmem:[#allocation7_spill] sm:$0xff] }
  0xa6   : > { %1547 = vmatprep.mubr.f32.mxu1 %v2097_v3  ;;  %1649 = vmatprep.mubr.f32.mxu0 %v2093_v2 }
  0xac   : > { %1722 = vmatpush3.bf16.xpose.msra.mxu1 %v2793_v25  ;;  %1818 = vmatpush3.bf16.xpose.msra.mxu0 %v2794_v50 }
  0xad   : > { %1724 = vmatprep.subr.bf16.mxu1 %v2795_v36  ;;  %1820 = vmatprep.subr.bf16.mxu0 %v2796_v27 }
  0xb4   : > { %1726 = vmatpush3.bf16.xpose.msra.mxu1 %v2797_v62  ;;  %1822 = vmatpush3.bf16.xpose.msra.mxu0 %v2798_v33 }
  0xb5   : > { %1728 = vmatprep.subr.bf16.mxu1 %v2799_v9  ;;  %1824 = vmatprep.subr.bf16.mxu0 %v2800_v15 }
  0xbc   : > { %1730 = vmatpush3.bf16.xpose.msra.mxu1 %v2801_v11  ;;  %1826 = vmatpush3.bf16.xpose.msra.mxu0 %v2802_v17 }
  0xbd   : > { %1732 = vmatprep.subr.bf16.mxu1 %v2803_v16  ;;  %1828 = vmatprep.subr.bf16.mxu0 %v2804_v49 }
  0xc4   : > { %1734 = vmatpush3.bf16.xpose.msra.mxu1 %v2805_v20  ;;  %1830 = vmatpush3.bf16.xpose.msra.mxu0 %v2806_v10 }
  0xc5   : > { %1736 = vmatprep.subr.bf16.mxu1 %v2807_v40  ;;  %1832 = vmatprep.subr.bf16.mxu0 %v2808_v6 }
  0xcc   : > { %1738 = vmatpush3.bf16.xpose.msra.mxu1 %v2809_v32  ;;  %1834 = vmatpush3.bf16.xpose.msra.mxu0 %v2810_v44 }
  0xcd   : > { %1740 = vmatprep.subr.bf16.mxu1 %v2811_v45  ;;  %1836 = vmatprep.subr.bf16.mxu0 %v2812_v13 }
  0xd4   : > { %1742 = vmatpush3.bf16.xpose.msra.mxu1 %v2813_v46  ;;  %1838 = vmatpush3.bf16.xpose.msra.mxu0 %v2814_v56 }
  0xd5   : > { %1744 = vmatprep.subr.bf16.mxu1 %v2815_v47  ;;  %1840 = vmatprep.subr.bf16.mxu0 %v2816_v42 }
  0xdc   : > { %1746 = vmatpush3.bf16.xpose.msra.mxu1 %v2817_v51  ;;  %1842 = vmatpush3.bf16.xpose.msra.mxu0 %v2500_v41 }
  0xe3   : > { %1548 = vmatmul.mubr.f32.vlgmr.msra.gmra.mrb[0].mxu1 %v2097_v3  ;;  %1650 = vmatmul.mubr.f32.vlgmr.msra.gmra.mrb[0].mxu0 %v2093_v2  ;;  %v1277_v3 = vrot.slane %v304_v54, %v1276_v61 }
  0xe7   : > { %v308_v39 = vpop.permute.xlu0 %307 }
  0xe8   : > { %v313_v52 = vrot.slane %v308_v39, %v312_v38 }
 0x1b6   : > { %v886_v34 = vpop.f32.mrb[0].mxu1  ;;  %v1264_v37 = vpop.f32.mrb[0].mxu0 }
 0x1b7   : > { %v1843_v55 = vadd.f32 %v886_v34, %v313_v52  ;;  %v888_v63 = vpop.f32.mrb[1].mxu1  ;;  %v1266_v41 = vpop.f32.mrb[1].mxu0 }
 0x1b8   : > { %v1845_v19 = vadd.f32 %v888_v63, %v313_v52 }
 0x1b9   : > { %v1844_v28 = vadd.f32 %v1843_v55, %v1264_v37 }
 0x1ba   : > { %v1846_v2 = vadd.f32 %v1845_v19, %v1266_v41 }
 0x1bb   : > { %v1280_v7 = vadd.f32 %v1844_v28, %v1273_v0 }
 0x1bc   : > { %v1281_v1 = vadd.f32 %v1846_v2, %v1277_v3 }
 0x1bd   : > { %v1439_v43 = vmul.f32 -1.442695, %v1280_v7 }
 0x1be   : > { %v1440_v29 = vmul.f32 -1.442695, %v1281_v1 }
 0x1bf   : > { %1914 = vpow2.f32 %v1439_v43 }
 0x1c0   : > { %1916 = vpow2.f32 %v1440_v29 }
 0x1c9   : > { %v1915_v8 = vpop.eup %1914 }
 0x1ca   : > { %v1917_v21 = vpop.eup %1916  ;;  %v1288_v4 = vadd.f32 1.0, %v1915_v8 }
 0x1cb   : > { %v1289_v22 = vadd.f32 1.0, %v1917_v21 }
 0x1cc   : > { %1918 = vrcp.f32 %v1288_v4 }
 0x1cd   : > { %1920 = vrcp.f32 %v1289_v22 }
 0x1d6   : > { %v1919_v14 = vpop.eup %1918 }
 0x1d7   : > { %v1921_v23 = vpop.eup %1920 }
 0x1d8   : > { %v1296_v26 = vcombine.low %v1919_v14, %v1921_v23 }
 0x1da   : > { %v1303_v12 = vrot.slane %v1296_v26, %v1302_v53 }
 0x1dc   : > { %v1310_v5 = vrot.slane %v1303_v12, %v1302_v53 }
 0x1de   : > { %1316 = vst.msk [vmem:[%s246_s26] sm:$0x3] %vm1314_vm1, %v1310_v5 }
 0x1df   : > { %1935 = shalt.err (!%p1932_p5)
}
 0x1e0   : > { %s1936_s11 = scalar_lea.hbm %s2683_s6, 32  ;;  %s1940_s14 = scalar_lea.hbm %s2734_s4, 64 }
 0x1e1   : > { %p1937_p6 = scmp.ne.s32.totalorder %s2683_s6, %s1936_s11  ;;  %p1941_p10 = scmp.lt.u32.totalorder %s2683_s6, %s2734_s4 }
 0x1e2   : > { %p1942_p11 = scmp.lt.u32.totalorder %s1940_s14, %s1936_s11  ;;  %p1944_p13 = scmp.lt.u32.totalorder %s1936_s11, %s2683_s6 }
 0x1e3   : > { %p1938_p7 = pnand %p1937_p6, %p2070_p4 }
 0x1e4   : > { %p1943_p12 = por %p1942_p11, %p1941_p10 }
 0x1e5   : > { %p1939_p9 = pneg %p1938_p7 }
 0x1e6   : > { %p1945_p0 = por %p1944_p13, %p1943_p12 }
 0x1e8   : > { %p1946_p1 = pnand %p1945_p0, %p1939_p9 }
 0x1ea   : > { %1949 = shalt.err (!%p1946_p1)
}
 0x1eb   : > { %1856 = dma.vmem_to_hbm [thread:$0]  (%p2070_p4), %s2685_s29, 32, %s2683_s6, %s1318_s7  }
 0x1ec PF: > { %p1862_p2 = scmp.ge.s32.totalorder %s2000_s20, 2  ;;  %s1346_s24 = sand.u32 1, %s1980_s15  }
 0x1ed   : > { %s1347_s26 = scalar_lea.sflag [#allocation3], %s1346_s24 }
 0x1ee   : > { %p1859_p3 = pnand %p1862_p2, %p2077_p8 }
 0x1f0   : > { %1975 = dma.done.wait (!%p1859_p3), %s1347_s26, 32  }
 0x1f1   : > { %1977 = vsyncadd (!%p1859_p3), %s1347_s26, 4294967264  ;;  %s17_s20 = sadd.s32 1, %s2000_s20   ;;  %s2818_s15 = smov %s1984_s16 }
 0x1f2   : > { %p14_p5 = scmp.ge.s32.totalorder %s17_s20, 4   ;;  %s2819_s16 = smov %s1988_s17 }
 0x1f3   : > { %s2820_s17 = smov %s2083_s28  ;;  %s2821_s18 = smov %s1996_s19 }
 0x1f4   : > { %s2822_s19 = smov %s2824_s23  ;;  %16 = sbr.rel (!%p14_p5) target bundleno = 4 (0x4), region = 77 }
 0x1fb   :  { %1352 = vsyncpa [#allocation3], 1 }
 0x1fc   :  { %1354 = vsyncpa [#allocation3 + $0x1], 1 }

</bundles_post_ra>
